<compile_context>
chip_gen: v5e
topology: v5e:2x2
jax: 0.10.0
libtpu: 0.0.40
codegen_flags: <defaults>
</compile_context>

<pallas_src>
import jax
import jax.numpy as jnp
from jax.experimental import pallas as pl
from jax.experimental.pallas import tpu as pltpu

NEG_SLOPE = 0.1


def _round_up(n: int, m: int) -> int:
    return ((n + m - 1) // m) * m


def mlp_softmax_kernel(xT_ref, w1_ref, b1_ref, w2_ref, b2_ref, oT_ref):
    """One batch tile, transposed layout (batch on the lane axis).

    xT_ref : (16, TB)   streamed input tile
    w1_ref : (32, 16)   PyTorch (out, in) layout -> W1 @ xT directly
    b1_ref : (32, 1)
    w2_ref : (4, 32)
    b2_ref : (4, 1)
    oT_ref : (4, TB)    softmax probabilities, transposed
    """
    xT = xT_ref[...]  # no redundant cast: fed straight to the MXU

    # Linear 1 (transposed): (32,16) @ (16,TB) + (32,1) -> (32,TB), f32 accumulate.
    h = jnp.dot(w1_ref[...], xT, preferred_element_type=jnp.float32) + b1_ref[...]

    # LeakyReLU(0.1) in f32 on the VPU.
    h = jnp.where(h >= 0, h, NEG_SLOPE * h)

    # Linear 2: (4,32) @ (32,TB) + (4,1) -> (4,TB).  Cast h back to the matmul
    # input dtype (no-op in the f32 path) so the MXU sees matching operands.
    logits = jnp.dot(w2_ref[...], h.astype(w2_ref.dtype),
                     preferred_element_type=jnp.float32) + b2_ref[...]

    # Numerically stable softmax over the 4 classes (axis 0): a handful of VPU
    # ops; exp + reciprocal go to the EUP slot.
    m = jnp.max(logits, axis=0, keepdims=True)
    e = jnp.exp(logits - m)
    denom = jnp.sum(e, axis=0, keepdims=True)
    oT_ref[...] = (e * pl.reciprocal(denom, approx=False)).astype(oT_ref.dtype)


def linear_model1_forward(x, w1, b1, w2, b2, *, block_batch=2048,
                          matmul_in_bf16=False):
    """Fused forward pass.

    x : (B, 16) float32
    w1: (32, 16), b1: (32,)   -- PyTorch nn.Linear (out, in) layout
    w2: (4, 32),  b2: (4,)
    Returns (B, 4) float32 softmax probabilities.
    """
    B, in_dim = x.shape
    mid_dim = w1.shape[0]
    out_dim = w2.shape[0]

    # Batch tile lives on the lane axis -> must be a multiple of 128.
    tb = min(_round_up(block_batch, 128), _round_up(B, 128))
    b_pad = _round_up(B, tb)
    grid = (b_pad // tb,)

    # Lane-dense layout: batch on the last (lane) axis; zero-pad the tail tile.
    # Padded columns just compute softmax(bias) and are sliced off below.
    xT = x.T
    if b_pad != B:
        xT = jnp.pad(xT, ((0, 0), (0, b_pad - B)))

    if matmul_in_bf16:
        # Halves HBM traffic for the streamed input on v6e/v7x; f32 accumulate
        # plus an f32 epilogue keep the numerics close to the f32 reference.
        xT = xT.astype(jnp.bfloat16)
        w1 = w1.astype(jnp.bfloat16)
        w2 = w2.astype(jnp.bfloat16)

    b1c = b1.reshape(mid_dim, 1).astype(jnp.float32)
    b2c = b2.reshape(out_dim, 1).astype(jnp.float32)

    in_bytes = jnp.dtype(xT.dtype).itemsize
    cost = pl.CostEstimate(
        flops=2 * B * (in_dim * mid_dim + mid_dim * out_dim),
        transcendentals=B * out_dim,
        bytes_accessed=(B * in_dim * in_bytes                       # x
                        + B * out_dim * 4                           # out
                        + (mid_dim * in_dim + out_dim * mid_dim) * in_bytes
                        + (mid_dim + out_dim) * 4),                 # biases
    )

    oT = pl.pallas_call(
        mlp_softmax_kernel,
        out_shape=jax.ShapeDtypeStruct((out_dim, b_pad), jnp.float32),
        grid=grid,
        in_specs=[
            pl.BlockSpec((in_dim, tb), lambda i: (0, i)),       # streamed x tile
            pl.BlockSpec((mid_dim, in_dim), lambda i: (0, 0)),  # resident weights
            pl.BlockSpec((mid_dim, 1), lambda i: (0, 0)),
            pl.BlockSpec((out_dim, mid_dim), lambda i: (0, 0)),
            pl.BlockSpec((out_dim, 1), lambda i: (0, 0)),
        ],
        out_specs=pl.BlockSpec((out_dim, tb), lambda i: (0, i)),
        compiler_params=pltpu.CompilerParams(
            dimension_semantics=("parallel",)),                 # megacore on v7x
        cost_estimate=cost,
    )(xT, w1, b1c, w2, b2c)

    return oT[:, :B].T


def torch_style_init(key, in_dim=16, mid_dim=32, out_dim=4):
    """PyTorch default init: uniform(-1/sqrt(fan_in), 1/sqrt(fan_in)), (out,in) layout."""
    k1, k2, k3, k4 = jax.random.split(key, 4)
    lim1 = 1.0 / jnp.sqrt(in_dim)
    lim2 = 1.0 / jnp.sqrt(mid_dim)
    w1 = jax.random.uniform(k1, (mid_dim, in_dim), jnp.float32, -lim1, lim1)
    b1 = jax.random.uniform(k2, (mid_dim,), jnp.float32, -lim1, lim1)
    w2 = jax.random.uniform(k3, (out_dim, mid_dim), jnp.float32, -lim2, lim2)
    b2 = jax.random.uniform(k4, (out_dim,), jnp.float32, -lim2, lim2)
    return w1, b1, w2, b2


def reference_forward(x, w1, b1, w2, b2):
    h = x @ w1.T + b1
    h = jnp.where(h >= 0, h, NEG_SLOPE * h)
    logits = h @ w2.T + b2
    return jax.nn.softmax(logits, axis=-1)


if __name__ == "__main__":
    key = jax.random.PRNGKey(0)
    k_x, k_p = jax.random.split(key)

    B, in_dim, mid_dim, out_dim = 8, 16, 32, 4
    x = jax.random.normal(k_x, (B, in_dim), dtype=jnp.float32)
    w1, b1, w2, b2 = torch_style_init(k_p, in_dim, mid_dim, out_dim)

    # f32 path (matches PyTorch module numerics).
    out = jax.block_until_ready(linear_model1_forward(x, w1, b1, w2, b2))
    ref = reference_forward(x, w1, b1, w2, b2)
    assert out.shape == (B, out_dim)
    assert jnp.allclose(out, ref, atol=1e-5, rtol=1e-5)
    assert jnp.allclose(jnp.sum(out, axis=-1), 1.0, atol=1e-5)

    # bf16-matmul path (v6e/v7x bandwidth optimization) -- looser tolerance.
    out_bf16 = jax.block_until_ready(
        linear_model1_forward(x, w1, b1, w2, b2, matmul_in_bf16=True))
    assert out_bf16.shape == (B, out_dim)
    assert jnp.allclose(jnp.sum(out_bf16, axis=-1), 1.0, atol=1e-2)
    assert jnp.allclose(out_bf16, ref, atol=5e-2)

    # TODO(synk): for production batches this small (B=8) XLA's fused dot+softmax
    # is as fast as any kernel; reserve this Pallas path for B in the thousands.

    print("KERNEL_OK")
</pallas_src>

<mosaic_0001>
module attributes {stable_mosaic.version = 11 : i64} {
  func.func @mlp_softmax_kernel(%arg0: i32, %arg1: memref<16x128xf32, #tpu.memory_space<vmem>>, %arg2: memref<32x16xf32, #tpu.memory_space<vmem>>, %arg3: memref<32x1xf32, #tpu.memory_space<vmem>>, %arg4: memref<4x32xf32, #tpu.memory_space<vmem>>, %arg5: memref<4x1xf32, #tpu.memory_space<vmem>>, %arg6: memref<4x128xf32, #tpu.memory_space<vmem>>) attributes {dimension_semantics = [#tpu.dimension_semantics<parallel>], iteration_bounds = array<i64: 1>, scalar_prefetch = 0 : i64, scratch_operands = 0 : i64, tpu.core_type = #tpu.core_type<tc>, window_params = [{transform_indices = @transform_0, window_bounds = array<i64: 16, 128>}, {pipeline_mode = #tpu.pipeline_mode<synchronous>, transform_indices = @transform_1, window_bounds = array<i64: 32, 16>}, {pipeline_mode = #tpu.pipeline_mode<synchronous>, transform_indices = @transform_2, window_bounds = array<i64: 32, 1>}, {pipeline_mode = #tpu.pipeline_mode<synchronous>, transform_indices = @transform_3, window_bounds = array<i64: 4, 32>}, {pipeline_mode = #tpu.pipeline_mode<synchronous>, transform_indices = @transform_4, window_bounds = array<i64: 4, 1>}, {transform_indices = @transform_5, window_bounds = array<i64: 4, 128>}]} {
    %c0 = arith.constant 0 : index
    %c0_0 = arith.constant 0 : index
    %0 = vector.load %arg1[%c0, %c0_0] : memref<16x128xf32, #tpu.memory_space<vmem>>, vector<16x128xf32>
    %c0_1 = arith.constant 0 : index
    %c0_2 = arith.constant 0 : index
    %1 = vector.load %arg2[%c0_1, %c0_2] : memref<32x16xf32, #tpu.memory_space<vmem>>, vector<32x16xf32>
    %cst = arith.constant dense<0.000000e+00> : vector<32x128xf32>
    %2 = tpu.matmul %1, %0, %cst {dimension_numbers = #tpu.dot_dimension_numbers<[1], [0], [0], [1], [0, 0, 1, 1], [], []>} : vector<32x16xf32>, vector<16x128xf32>, vector<32x128xf32> -> vector<32x128xf32>
    %c0_3 = arith.constant 0 : index
    %c0_4 = arith.constant 0 : index
    %3 = vector.load %arg3[%c0_3, %c0_4] : memref<32x1xf32, #tpu.memory_space<vmem>>, vector<32x1xf32>
    %4 = vector.broadcast %3 : vector<32x1xf32> to vector<32x128xf32>
    %5 = arith.addf %2, %4 : vector<32x128xf32>
    %cst_5 = arith.constant 0.000000e+00 : f32
    %6 = vector.broadcast %cst_5 : f32 to vector<32x128xf32>
    %7 = arith.cmpf oge, %5, %6 : vector<32x128xf32>
    %cst_6 = arith.constant 1.000000e-01 : f32
    %8 = vector.broadcast %cst_6 : f32 to vector<32x128xf32>
    %9 = arith.mulf %8, %5 : vector<32x128xf32>
    %10 = arith.select %7, %5, %9 : vector<32x128xi1>, vector<32x128xf32>
    %c0_7 = arith.constant 0 : index
    %c0_8 = arith.constant 0 : index
    %11 = vector.load %arg4[%c0_7, %c0_8] : memref<4x32xf32, #tpu.memory_space<vmem>>, vector<4x32xf32>
    %cst_9 = arith.constant dense<0.000000e+00> : vector<4x128xf32>
    %12 = tpu.matmul %11, %10, %cst_9 {dimension_numbers = #tpu.dot_dimension_numbers<[1], [0], [0], [1], [0, 0, 1, 1], [], []>} : vector<4x32xf32>, vector<32x128xf32>, vector<4x128xf32> -> vector<4x128xf32>
    %c0_10 = arith.constant 0 : index
    %c0_11 = arith.constant 0 : index
    %13 = vector.load %arg5[%c0_10, %c0_11] : memref<4x1xf32, #tpu.memory_space<vmem>>, vector<4x1xf32>
    %14 = vector.broadcast %13 : vector<4x1xf32> to vector<4x128xf32>
    %15 = arith.addf %12, %14 : vector<4x128xf32>
    %cst_12 = arith.constant dense<0xFF800000> : vector<128xf32>
    %16 = vector.multi_reduction <maximumf>, %15, %cst_12 [0] : vector<4x128xf32> to vector<128xf32>
    %17 = vector.shape_cast %16 : vector<128xf32> to vector<1x128xf32>
    %18 = vector.broadcast %17 : vector<1x128xf32> to vector<4x128xf32>
    %19 = arith.subf %15, %18 : vector<4x128xf32>
    %20 = math.exp %19 : vector<4x128xf32>
    %cst_13 = arith.constant dense<0.000000e+00> : vector<128xf32>
    %21 = vector.multi_reduction <add>, %20, %cst_13 [0] : vector<4x128xf32> to vector<128xf32>
    %22 = vector.shape_cast %21 : vector<128xf32> to vector<1x128xf32>
    %23 = tpu.reciprocal %22 : vector<1x128xf32> -> vector<1x128xf32>
    %24 = vector.broadcast %23 : vector<1x128xf32> to vector<4x128xf32>
    %25 = arith.mulf %20, %24 : vector<4x128xf32>
    %c0_14 = arith.constant 0 : index
    %c0_15 = arith.constant 0 : index
    %26 = vector.load %arg6[%c0_14, %c0_15] : memref<4x128xf32, #tpu.memory_space<vmem>>, vector<4x128xf32>
    tpu.vector_store %arg6[%c0_14, %c0_15], %25 {strides = array<i32>} : memref<4x128xf32, #tpu.memory_space<vmem>>, vector<4x128xf32>,
    return
  }
  func.func @transform_0(%arg0: i32) -> (i32, i32) {
    %c0_i32 = arith.constant 0 : i32
    %c0_i32_0 = arith.constant 0 : i32
    return %c0_i32, %arg0 : i32, i32
  }
  func.func @transform_1(%arg0: i32) -> (i32, i32) {
    %c0_i32 = arith.constant 0 : i32
    %c0_i32_0 = arith.constant 0 : i32
    %c0_i32_1 = arith.constant 0 : i32
    return %c0_i32, %c0_i32_0 : i32, i32
  }
  func.func @transform_2(%arg0: i32) -> (i32, i32) {
    %c0_i32 = arith.constant 0 : i32
    %c0_i32_0 = arith.constant 0 : i32
    %c0_i32_1 = arith.constant 0 : i32
    return %c0_i32, %c0_i32_0 : i32, i32
  }
  func.func @transform_3(%arg0: i32) -> (i32, i32) {
    %c0_i32 = arith.constant 0 : i32
    %c0_i32_0 = arith.constant 0 : i32
    %c0_i32_1 = arith.constant 0 : i32
    return %c0_i32, %c0_i32_0 : i32, i32
  }
  func.func @transform_4(%arg0: i32) -> (i32, i32) {
    %c0_i32 = arith.constant 0 : i32
    %c0_i32_0 = arith.constant 0 : i32
    %c0_i32_1 = arith.constant 0 : i32
    return %c0_i32, %c0_i32_0 : i32, i32
  }
  func.func @transform_5(%arg0: i32) -> (i32, i32) {
    %c0_i32 = arith.constant 0 : i32
    %c0_i32_0 = arith.constant 0 : i32
    return %c0_i32, %arg0 : i32, i32
  }
}

</mosaic_0001>

<bundles_post_ra>
// kernel: tpu_custom_call.1
= control target key start
LH: loop header
LB: loop body
LE: loop exit
PB: predicated region body
PF: predicated region fallthrough
CT: control target
= control target key end

     0   :  { %vm51_vm0 = vcmask 130048   ;;  %v230_v4 = vmov 0   ;;  %s305_s0 = inlined_call_operand.vmem [shape: f32[16,128], index: 0, kind: input, shape index: {}]   ;;  %s306_s1 = inlined_call_operand.vmem [shape: f32[32,16], index: 1, kind: input, shape index: {}]   ;;  %s307_s2 = inlined_call_operand.vmem [shape: f32[32,1], index: 2, kind: input, shape index: {}]   ;;  %s308_s3 = inlined_call_operand.vmem [shape: f32[4,32], index: 3, kind: input, shape index: {}]   ;;  %s309_s4 = inlined_call_operand.vmem [shape: f32[4,1], index: 4, kind: input, shape index: {}]   ;;  %s310_s5 = inlined_call_operand.hbm [shape: f32[4,128], index: 5, kind: output, shape index: {}]  }
   0x1   :  { %v22_v0 = vld [vmem:[%s305_s0 + $0x8] sm:$0xff]  ;;  %v21_v1 = vld [vmem:[%s305_s0] sm:$0xff]  ;;  %v26_v3 = vld [vmem:[%s306_s1 + $0x18] sm:$0xff]  ;;  %197 = vset.pattern.permute.xlu0 %v230_v4 }
   0x2   :  { %191 = vmatpush.msra.mxu2 %v22_v0  ;;  %192 = vmatpush.msra.mxu3 %v22_v0  ;;  %v24_v2 = vld [vmem:[%s306_s1 + $0x8] sm:$0xff]  ;;  %v30_v5 = vld [vmem:[%s307_s2 + $0x18] sm:$0xff]  ;;  %v23_v6 = vld [vmem:[%s306_s1] sm:$0xff] }
   0x3   :  { %78 = vmatpush.msra.mxu0 %v22_v0 }
   0x4   :  { %193 = vmatpush.msra.mxu2 %v21_v1  ;;  %194 = vmatpush.msra.mxu3 %v21_v1 }
   0x5   :  { %10 = vsyncpa [#allocation3], 0  ;;  %187 = vmatmul.msk.f32.vlgmr.msra.gmra.mxu2 %vm51_vm0, %v24_v2  ;;  %189 = vmatmul.msk.f32.vlgmr.msra.gmra.mxu3 %vm51_vm0, %v26_v3  ;;  %v28_v7 = vld [vmem:[%s307_s2 + $0x8] sm:$0xff]  ;;  %v25_v8 = vld [vmem:[%s306_s1 + $0x10] sm:$0xff]  ;;  %vm112_vm5 = vcmask 261120   ;;  %vm136_vm6 = vcmask 1043456  }
   0x6   :  { %79 = vmatpush.msra.mxu0 %v21_v1  ;;  %48 = vperm.xlu0 %197, %v30_v5   ;;  %v29_v9 = vld [vmem:[%s307_s2 + $0x10] sm:$0xff]  ;;  %v27_v10 = vld [vmem:[%s307_s2] sm:$0xff]  ;;  %s177_s16 = sshll.u32 %s310_s5, 4  ;;  %s178_s16 = int_to_ptr.hbm [resolvable:$true] %s177_s16 }
   0x7   :  { %186 = vmatmul.msk.f32.vlgmr.msra.gmra.mxu0 %vm51_vm0, %v23_v6  ;;  %198 = vset.pattern.permute.xlu1 %v230_v4  ;;  %v106_v11 = vld [vmem:[%s309_s4] sm:$0xf] }
   0x8   :  { %38 = vperm.xlu1 %198, %v28_v7   ;;  %199 = vset.pattern.permute.xlu2 %v230_v4  ;;  %v105_v31 = vld [vmem:[%s308_s3] sm:$0xf]  ;;  %s231_s3 = smov [#allocation2]  }
   0x9   :  { %109 = vperm.xlu2 %199, %v106_v11   ;;  %s175_s4 = sshll.u32 %s231_s3, 4  ;;  %s176_s4 = int_to_ptr.vmem [resolvable:$true] %s175_s4 }
   0xd   :  { %188 = vmatmul.msk.f32.gmra.mxu2 %vm51_vm0, %v25_v8 }
   0xe   :  { %43 = vperm.xlu0 %197, %v29_v9  }
  0x10   :  { %33 = vperm.xlu1 %198, %v27_v10  }
  0x63   :  { %v110_v33 = vpop.permute.xlu2 %109 }
  0x78   :  { %v49_v13 = vpop.permute.xlu0 %48 }
  0x7a   :  { %v39_v12 = vpop.permute.xlu1 %38 }
  0x80   :  { %v44_v22 = vpop.permute.xlu0 %43 }
  0x82   :  { %v34_v19 = vpop.permute.xlu1 %33 }
  0x84   :  { %v81_v20 = vpop.f32.mrf.mxu0 }
  0x85   :  { %v82_v24 = vadd.f32 %v81_v20, %v34_v19 }
  0x87   :  { %v97_v29 = vmul.f32 0.1, %v82_v24  ;;  %vm93_vm4 = vcmp.ge.f32.partialorder %v82_v24, 0.0 }
  0x88   :  { %v84_v14 = vpop.f32.mrf.mxu2  ;;  %v90_v15 = vpop.f32.mrf.mxu3 }
  0x89   :  { %v91_v16 = vadd.f32 %v90_v15, %v49_v13  ;;  %v85_v21 = vadd.f32 %v84_v14, %v39_v12  ;;  %v101_v32 = vsel %vm93_vm4, %v82_v24, %v97_v29 }
  0x8b   :  { %vm96_vm1 = vcmp.ge.f32.partialorder %v91_v16, 0.0  ;;  %v100_v17 = vmul.f32 0.1, %v91_v16  ;;  %v98_v27 = vmul.f32 0.1, %v85_v21  ;;  %vm94_vm3 = vcmp.ge.f32.partialorder %v85_v21, 0.0 }
  0x8d   :  { %v104_v18 = vsel %vm96_vm1, %v91_v16, %v100_v17  ;;  %v102_v30 = vsel %vm94_vm3, %v85_v21, %v98_v27 }
  0x8e   :  { %128 = vmatpush.msra.mxu1 %v104_v18 }
  0x90   :  { %v87_v23 = vpop.f32.mrf.mxu2 }
  0x91   :  { %v88_v25 = vadd.f32 %v87_v23, %v44_v22 }
  0x93   :  { %vm95_vm2 = vcmp.ge.f32.partialorder %v88_v25, 0.0  ;;  %v99_v26 = vmul.f32 0.1, %v88_v25 }
  0x95   :  { %v103_v28 = vsel %vm95_vm2, %v88_v25, %v99_v26 }
  0x96   :  { %129 = vmatpush.msra.mxu1 %v103_v28 }
  0x98   :  { %130 = vmatpush.msra.mxu1 %v102_v30 }
  0x9a   :  { %131 = vmatpush.msra.mxu1 %v101_v32 }
  0x9b   :  { %190 = vmatmul.msk.f32.vlgmr.msra.gmra.mxu1 %vm112_vm5, %v105_v31 }
 0x118   :  { %v133_v34 = vpop.f32.mrf.mxu1 }
 0x119   :  { %v134_v35 = vadd.f32 %v133_v34, %v110_v33 }
 0x11b   :  { %v137_v36 = vsel %vm136_vm6, %v134_v35, -inf }
 0x11c   :  { %v138_v37 = vrot.slane %v137_v36, 4 }
 0x11e   :  { %v139_v38 = vmax.f32 %v137_v36, %v138_v37 }
 0x120   :  { %v140_v39 = vrot.slane %v139_v38, 2 }
 0x122   :  { %v141_v40 = vmax.f32 %v139_v38, %v140_v39 }
 0x124   :  { %v142_v41 = vrot.slane %v141_v40, 1 }
 0x126   :  { %v143_v42 = vmax.f32 %v141_v40, %v142_v41 }
 0x128   :  { %v144_v43 = vsub.f32 %v134_v35, %v143_v42 }
 0x12a   :  { %v145_v44 = vmul.f32 1.442695, %v144_v43 }
 0x12c   :  { %200 = vpow2.f32 %v145_v44 }
 0x132   :  { %v201_v45 = vpop.eup %200 }
 0x133   :  { %v147_v46 = vsel %vm136_vm6, %v201_v45, 0.0 }
 0x134   :  { %v148_v47 = vrot.slane %v147_v46, 4 }
 0x136   :  { %v149_v48 = vadd.f32 %v148_v47, %v147_v46 }
 0x138   :  { %v150_v49 = vrot.slane %v149_v48, 2 }
 0x13a   :  { %v151_v50 = vadd.f32 %v150_v49, %v149_v48 }
 0x13c   :  { %v152_v51 = vrot.slane %v151_v50, 1 }
 0x13e   :  { %v153_v52 = vadd.f32 %v152_v51, %v151_v50 }
 0x140   :  { %202 = vrcp.f32 %v153_v52  ;;  %v165_v56 = vand.u32 2147483648, %v153_v52  ;;  %v163_v58 = vand.u32 2147483647, %v153_v52  ;;  %vm159_vm8 = vweird.f32 %v153_v52 }
 0x142   :  { %v166_v60 = vor.u32 1.1754944e-38, %v165_v56  ;;  %vm164_vm10 = vcmp.eq.f32.partialorder %v163_v58, 8.507059e+37 }
 0x146   :  { %v203_v53 = vpop.eup %202 }
 0x147   :  { %v155_v54 = vmul.f32 %v203_v53, %v153_v52  ;;  %vm160_vm7 = vweird.f32 %v203_v53 }
 0x148   :  { %vm161_vm9 = vmor %vm159_vm8, %vm160_vm7 }
 0x149   :  { %v156_v55 = vsub.f32 1.0, %v155_v54 }
 0x14b   :  { %v157_v57 = vmul.f32 %v203_v53, %v156_v55 }
 0x14d   :  { %v158_v59 = vadd.f32 %v203_v53, %v157_v57 }
 0x14f   :  { %v162_v61 = vsel %vm161_vm9, %v203_v53, %v158_v59 }
 0x150   :  { %v167_v62 = vsel %vm164_vm10, %v166_v60, %v162_v61 }
 0x151   :  { %v168_v63 = vmul.f32 %v201_v45, %v167_v62 }
 0x153   :  { %169 = vst [vmem:[#allocation2] sm:$0xf] %v168_v63 }
 0x154   :  { %180 = dma.vmem_to_hbm [thread:$0]  %s176_s4, 64, %s178_s16, [#allocation3]  }
 0x155   :  { %228 = dma.done.wait [#allocation3], 64  }
 0x156   :  { %229 = vsyncadd [#allocation3], 4294967232 }
 0x157   :  { %185 = vsyncpa [#allocation3], 1 }

</bundles_post_ra>
